<compile_context>
chip_gen: v5e
topology: v5e:2x2
jax: 0.10.0
libtpu: 0.0.40
codegen_flags: <defaults>
</compile_context>

<pallas_src>
import functools

import jax
import jax.numpy as jnp
import numpy as np
from jax.experimental import pallas as pl
from jax.experimental.pallas import tpu as pltpu

# ---- module constants (from PromptLearner.__init__) -------------------------
CTX_DIM = 512                                  # ctx_dim
N_CTX = 4                                      # n_ctx ("A photo of a")
N_CLS_CTX = 4                                  # n_cls_ctx ("X X X X" slots)
SEQ_LEN = 77                                   # clip.tokenize context length
N_PREFIX = N_CTX + 1                           # 5  -> embedding[:, :5, :]
N_SUFFIX = SEQ_LEN - (N_CTX + 1 + N_CLS_CTX)   # 68 -> embedding[:, 9:, :]


def _prompt_kernel(label_ref, template_ref, ctx_table_ref, out_ref,
                   *, bb, n_prefix, n_cls_ctx):
    """Assemble BB prompts: bulk template store + 4-row ctx overwrite each."""
    i = pl.program_id(0)
    for j in range(bb):                       # bb is a small static constant
        # One aligned full-(77, dim) store of the fused prefix|pad|suffix.
        out_ref[j] = template_ref[0]
        # Overwrite only the 4 ctx rows with the gathered class vectors.
        lbl = label_ref[i * bb + j]           # scalar read from SMEM
        out_ref[j, n_prefix:n_prefix + n_cls_ctx, :] = ctx_table_ref[lbl]


def prompt_learner_forward(label, cls_ctx, token_prefix, token_suffix,
                           *, block_b=8):
    """Equivalent of PromptLearner.forward(label).

    label:         (B,) int class ids
    cls_ctx:       (num_class, N_CLS_CTX, CTX_DIM)  learnable class vectors
    token_prefix:  (1, N_PREFIX, CTX_DIM)           frozen embedding prefix
    token_suffix:  (1, N_SUFFIX, CTX_DIM)           frozen embedding suffix
    returns:       (B, SEQ_LEN, CTX_DIM)
    """
    b = int(label.shape[0])
    num_class, n_cls_ctx, dim = cls_ctx.shape
    n_prefix = token_prefix.shape[1]
    n_suffix = token_suffix.shape[1]
    total = n_prefix + n_cls_ctx + n_suffix
    dtype = cls_ctx.dtype
    itemsize = jnp.dtype(dtype).itemsize

    # Fuse prefix/suffix into one template; rows [n_prefix, n_prefix+n_cls_ctx)
    # are don't-care and get overwritten by the kernel.
    template = jnp.concatenate(
        [token_prefix.astype(dtype),
         jnp.zeros((1, n_cls_ctx, dim), dtype),
         token_suffix.astype(dtype)], axis=1)                  # (1, 77, dim)

    # Clamp labels (robustness: avoid OOB dynamic reads of the VMEM table).
    label = jnp.clip(label.astype(jnp.int32), 0, num_class - 1)

    # Batch BB elements per grid step; pad the batch up to a multiple of BB.
    bb = max(1, min(block_b, b))
    grid_b = pl.cdiv(b, bb)
    b_pad = grid_b * bb
    if b_pad != b:
        label = jnp.concatenate(
            [label, jnp.zeros((b_pad - b,), jnp.int32)], axis=0)

    kernel = functools.partial(
        _prompt_kernel, bb=bb, n_prefix=n_prefix, n_cls_ctx=n_cls_ctx)

    grid_spec = pltpu.PrefetchScalarGridSpec(
        num_scalar_prefetch=1,      # labels -> SMEM, read inside the kernel
        grid=(grid_b,),
        in_specs=[
            # fused prefix|pad|suffix template, same block every step
            pl.BlockSpec((1, total, dim), lambda i, lbl: (0, 0, 0)),
            # full cls_ctx table resident in VMEM (num_class * 8 KB @ f32)
            pl.BlockSpec((num_class, n_cls_ctx, dim),
                         lambda i, lbl: (0, 0, 0)),
        ],
        out_specs=pl.BlockSpec((bb, total, dim), lambda i, lbl: (i, 0, 0)),
    )

    # Advisory cost: pure memory traffic, no flops.
    bytes_accessed = (b_pad * total * dim * itemsize       # output writes
                      + total * dim * itemsize             # template read
                      + num_class * n_cls_ctx * dim * itemsize  # table read
                      + b_pad * 4)                         # labels
    cost = pl.CostEstimate(flops=0, transcendentals=0,
                           bytes_accessed=int(bytes_accessed))

    # VMEM budget: double-buffered out block + template + resident table.
    vmem_est = 2 * (bb * total * dim
                    + total * dim
                    + num_class * n_cls_ctx * dim) * itemsize
    vmem_limit = int(max(32 * 1024 * 1024,
                         min(int(vmem_est * 1.5) + (2 << 20),
                             120 * 1024 * 1024)))

    out = pl.pallas_call(
        kernel,
        out_shape=jax.ShapeDtypeStruct((b_pad, total, dim), dtype),
        grid_spec=grid_spec,
        compiler_params=pltpu.CompilerParams(
            dimension_semantics=("parallel",),   # independent blocks -> v7x 2 TCs
            vmem_limit_bytes=vmem_limit),
        cost_estimate=cost,
    )(label, template, cls_ctx)

    return out[:b] if b_pad != b else out


def _reference(label, cls_ctx, token_prefix, token_suffix):
    b = label.shape[0]
    return jnp.concatenate(
        [jnp.broadcast_to(token_prefix, (b,) + token_prefix.shape[1:]),
         cls_ctx[label],
         jnp.broadcast_to(token_suffix, (b,) + token_suffix.shape[1:])],
        axis=1)


if __name__ == "__main__":
    num_class = 10

    key = jax.random.PRNGKey(0)
    k_cls, k_emb, k_lbl = jax.random.split(key, 3)

    # nn.init.normal_(cls_vectors, std=0.02) -> (num_class, 4, 512)
    cls_ctx = 0.02 * jax.random.normal(
        k_cls, (num_class, N_CLS_CTX, CTX_DIM), dtype=jnp.float32)

    # Synthetic stand-in for token_embedding(clip.tokenize(ctx_init)).
    # TODO(synk): real CLIP token_embedding lookup is a checkpoint-dependent
    # table lookup outside the scope of this synthetic kernel.
    embedding = jax.random.normal(
        k_emb, (1, SEQ_LEN, CTX_DIM), dtype=jnp.float32)
    token_prefix = embedding[:, :N_CTX + 1, :]                  # (1, 5, 512)
    token_suffix = embedding[:, N_CTX + 1 + N_CLS_CTX:, :]      # (1, 68, 512)

    # Case 1: batch=2 (bb == b, single grid step, no padding).
    label_a = jax.random.randint(k_lbl, (2,), 0, num_class, dtype=jnp.int32)
    out_a = jax.block_until_ready(
        prompt_learner_forward(label_a, cls_ctx, token_prefix, token_suffix))
    ref_a = _reference(label_a, cls_ctx, token_prefix, token_suffix)
    assert out_a.shape == (2, SEQ_LEN, CTX_DIM), out_a.shape
    np.testing.assert_allclose(np.asarray(out_a), np.asarray(ref_a),
                               rtol=0, atol=0)

    # Case 2: batch=6 with block_b=4 (two grid steps + tail padding path).
    label_b = jax.random.randint(jax.random.fold_in(k_lbl, 1), (6,),
                                 0, num_class, dtype=jnp.int32)
    out_b = jax.block_until_ready(
        prompt_learner_forward(label_b, cls_ctx, token_prefix, token_suffix,
                               block_b=4))
    ref_b = _reference(label_b, cls_ctx, token_prefix, token_suffix)
    assert out_b.shape == (6, SEQ_LEN, CTX_DIM), out_b.shape
    np.testing.assert_allclose(np.asarray(out_b), np.asarray(ref_b),
                               rtol=0, atol=0)

    print("KERNEL_OK")
</pallas_src>

<mosaic_0001>
module attributes {stable_mosaic.version = 11 : i64} {
  func.func @_prompt_kernel(%arg0: i32, %arg1: memref<2xi32, #tpu.memory_space<smem>>, %arg2: memref<1x77x512xf32, #tpu.memory_space<vmem>>, %arg3: memref<10x4x512xf32, #tpu.memory_space<vmem>>, %arg4: memref<2x77x512xf32, #tpu.memory_space<vmem>>) attributes {dimension_semantics = [#tpu.dimension_semantics<parallel>], iteration_bounds = array<i64: 1>, scalar_prefetch = 1 : i64, scratch_operands = 0 : i64, tpu.core_type = #tpu.core_type<tc>, window_params = [{pipeline_mode = #tpu.pipeline_mode<synchronous>, transform_indices = @transform_0, window_bounds = array<i64: 1, 77, 512>}, {pipeline_mode = #tpu.pipeline_mode<synchronous>, transform_indices = @transform_1, window_bounds = array<i64: 10, 4, 512>}, {transform_indices = @transform_2, window_bounds = array<i64: 2, 77, 512>}]} {
    %c0 = arith.constant 0 : index
    %c0_0 = arith.constant 0 : index
    %c0_1 = arith.constant 0 : index
    %0 = vector.load %arg2[%c0, %c0_0, %c0_1] : memref<1x77x512xf32, #tpu.memory_space<vmem>>, vector<1x77x512xf32>
    %1 = vector.shape_cast %0 : vector<1x77x512xf32> to vector<77x512xf32>
    %c0_2 = arith.constant 0 : index
    %c0_3 = arith.constant 0 : index
    %c0_4 = arith.constant 0 : index
    %2 = vector.load %arg4[%c0_2, %c0_3, %c0_4] : memref<2x77x512xf32, #tpu.memory_space<vmem>>, vector<1x77x512xf32>
    %3 = vector.shape_cast %2 : vector<1x77x512xf32> to vector<77x512xf32>
    %4 = vector.shape_cast %1 : vector<77x512xf32> to vector<1x77x512xf32>
    tpu.vector_store %arg4[%c0_2, %c0_3, %c0_4], %4 {strides = array<i32>} : memref<2x77x512xf32, #tpu.memory_space<vmem>>, vector<1x77x512xf32>,
    %c2_i32 = arith.constant 2 : i32
    %5 = arith.muli %arg0, %c2_i32 : i32
    %c0_i32 = arith.constant 0 : i32
    %6 = arith.addi %5, %c0_i32 : i32
    %7 = arith.index_cast %6 : i32 to index
    %8 = memref.load %arg1[%7] : memref<2xi32, #tpu.memory_space<smem>>
    %9 = arith.index_cast %8 : i32 to index
    %c0_5 = arith.constant 0 : index
    %c0_6 = arith.constant 0 : index
    %10 = vector.load %arg3[%9, %c0_5, %c0_6] : memref<10x4x512xf32, #tpu.memory_space<vmem>>, vector<1x4x512xf32>
    %11 = vector.shape_cast %10 : vector<1x4x512xf32> to vector<4x512xf32>
    %c0_7 = arith.constant 0 : index
    %c5 = arith.constant 5 : index
    %c0_8 = arith.constant 0 : index
    %12 = vector.load %arg4[%c0_7, %c5, %c0_8] : memref<2x77x512xf32, #tpu.memory_space<vmem>>, vector<1x4x512xf32>
    %13 = vector.shape_cast %12 : vector<1x4x512xf32> to vector<4x512xf32>
    %14 = vector.shape_cast %11 : vector<4x512xf32> to vector<1x4x512xf32>
    tpu.vector_store %arg4[%c0_7, %c5, %c0_8], %14 {strides = array<i32>} : memref<2x77x512xf32, #tpu.memory_space<vmem>>, vector<1x4x512xf32>,
    %c0_9 = arith.constant 0 : index
    %c0_10 = arith.constant 0 : index
    %c0_11 = arith.constant 0 : index
    %15 = vector.load %arg2[%c0_9, %c0_10, %c0_11] : memref<1x77x512xf32, #tpu.memory_space<vmem>>, vector<1x77x512xf32>
    %16 = vector.shape_cast %15 : vector<1x77x512xf32> to vector<77x512xf32>
    %c1 = arith.constant 1 : index
    %c0_12 = arith.constant 0 : index
    %c0_13 = arith.constant 0 : index
    %17 = vector.load %arg4[%c1, %c0_12, %c0_13] : memref<2x77x512xf32, #tpu.memory_space<vmem>>, vector<1x77x512xf32>
    %18 = vector.shape_cast %17 : vector<1x77x512xf32> to vector<77x512xf32>
    %19 = vector.shape_cast %16 : vector<77x512xf32> to vector<1x77x512xf32>
    tpu.vector_store %arg4[%c1, %c0_12, %c0_13], %19 {strides = array<i32>} : memref<2x77x512xf32, #tpu.memory_space<vmem>>, vector<1x77x512xf32>,
    %c2_i32_14 = arith.constant 2 : i32
    %20 = arith.muli %arg0, %c2_i32_14 : i32
    %c1_i32 = arith.constant 1 : i32
    %21 = arith.addi %20, %c1_i32 : i32
    %22 = arith.index_cast %21 : i32 to index
    %23 = memref.load %arg1[%22] : memref<2xi32, #tpu.memory_space<smem>>
    %24 = arith.index_cast %23 : i32 to index
    %c0_15 = arith.constant 0 : index
    %c0_16 = arith.constant 0 : index
    %25 = vector.load %arg3[%24, %c0_15, %c0_16] : memref<10x4x512xf32, #tpu.memory_space<vmem>>, vector<1x4x512xf32>
    %26 = vector.shape_cast %25 : vector<1x4x512xf32> to vector<4x512xf32>
    %c1_17 = arith.constant 1 : index
    %c5_18 = arith.constant 5 : index
    %c0_19 = arith.constant 0 : index
    %27 = vector.load %arg4[%c1_17, %c5_18, %c0_19] : memref<2x77x512xf32, #tpu.memory_space<vmem>>, vector<1x4x512xf32>
    %28 = vector.shape_cast %27 : vector<1x4x512xf32> to vector<4x512xf32>
    %29 = vector.shape_cast %26 : vector<4x512xf32> to vector<1x4x512xf32>
    tpu.vector_store %arg4[%c1_17, %c5_18, %c0_19], %29 {strides = array<i32>} : memref<2x77x512xf32, #tpu.memory_space<vmem>>, vector<1x4x512xf32>,
    return
  }
  func.func @transform_0(%arg0: i32, %arg1: memref<2xi32, #tpu.memory_space<smem>>) -> (i32, i32, i32) {
    %c0_i32 = arith.constant 0 : i32
    %c0_i32_0 = arith.constant 0 : i32
    %c0_i32_1 = arith.constant 0 : i32
    %c0_i32_2 = arith.constant 0 : i32
    return %c0_i32, %c0_i32_0, %c0_i32_1 : i32, i32, i32
  }
  func.func @transform_1(%arg0: i32, %arg1: memref<2xi32, #tpu.memory_space<smem>>) -> (i32, i32, i32) {
    %c0_i32 = arith.constant 0 : i32
    %c0_i32_0 = arith.constant 0 : i32
    %c0_i32_1 = arith.constant 0 : i32
    %c0_i32_2 = arith.constant 0 : i32
    return %c0_i32, %c0_i32_0, %c0_i32_1 : i32, i32, i32
  }
  func.func @transform_2(%arg0: i32, %arg1: memref<2xi32, #tpu.memory_space<smem>>) -> (i32, i32, i32) {
    %c0_i32 = arith.constant 0 : i32
    %c0_i32_0 = arith.constant 0 : i32
    %c0_i32_1 = arith.constant 0 : i32
    return %arg0, %c0_i32, %c0_i32_0 : i32, i32, i32
  }
}

</mosaic_0001>

<bundles_post_ra>
// kernel: tpu_custom_call.1
= control target key start
LH: loop header
LB: loop body
LE: loop exit
PB: predicated region body
PF: predicated region fallthrough
CT: control target
= control target key end

     0   :  { %s323_s15 = smov [#allocation3]   ;;  %s785_s0 = inlined_call_operand.vmem [shape: s32[2], index: 0, kind: input, shape index: {}]   ;;  %s786_s1 = inlined_call_operand.vmem [shape: f32[1,77,512], index: 1, kind: input, shape index: {}]   ;;  %s787_s2 = inlined_call_operand.vmem [shape: f32[10,4,512], index: 2, kind: input, shape index: {}]   ;;  %s788_s3 = inlined_call_operand.vmem [shape: f32[2,77,512], index: 3, kind: output, shape index: {}]  }
   0x1   :  { %s9_s14 = sshll.u32 %s785_s0, 4  ;;  %s10_s14 = int_to_ptr.vmem [resolvable:$true] %s9_s14 }
   0x2   :  { %12 = dma.vmem_to_smem %s10_s14, 16, %s323_s15, [#allocation2] }
   0x3   :  { %321 = dma.done.wait [#allocation2], 16 }
   0x4   :  { %322 = vsyncadd [#allocation2], 4294967280 }
   0x5   :  { %15 = sfence }
   0x6   :  { %s101_s16 = sld [smem:[#allocation3]]  ;;  %v20_v0 = vld [vmem:[%s786_s1] sm:$0xff]  ;;  %v21_v1 = vld [vmem:[%s786_s1 + $0x8] sm:$0xff]  ;;  %v22_v2 = vld [vmem:[%s786_s1 + $0x10] sm:$0xff] }
   0x7   :  { %s295_s0 = sld [smem:[#allocation3 + $0x1]]  ;;  %60 = vst [vmem:[%s788_s3] sm:$0xff] %v20_v0  ;;  %v23_v3 = vld [vmem:[%s786_s1 + $0x18] sm:$0xff]  ;;  %v24_v4 = vld [vmem:[%s786_s1 + $0x20] sm:$0xff]  ;;  %v25_v5 = vld [vmem:[%s786_s1 + $0x28] sm:$0xff] }
   0x8   :  { %61 = vst [vmem:[%s788_s3 + $0x8] sm:$0xff] %v21_v1  ;;  %v26_v6 = vld [vmem:[%s786_s1 + $0x30] sm:$0xff]  ;;  %v27_v7 = vld [vmem:[%s786_s1 + $0x38] sm:$0xff]  ;;  %v446_v20 = vld [vmem:[%s786_s1 + $0x40] sm:$0xff] }
   0x9   :  { %62 = vst [vmem:[%s788_s3 + $0x10] sm:$0xff] %v22_v2  ;;  %v454_v21 = vld [vmem:[%s786_s1 + $0x48] sm:$0xff]  ;;  %v462_v22 = vld [vmem:[%s786_s1 + $0x50] sm:$0xff]  ;;  %v31_v23 = vld [vmem:[%s786_s1 + $0x58] sm:$0xff] }
   0xa   :  { %63 = vst [vmem:[%s788_s3 + $0x18] sm:$0xff] %v23_v3  ;;  %v32_v24 = vld [vmem:[%s786_s1 + $0x60] sm:$0xff]  ;;  %v33_v25 = vld [vmem:[%s786_s1 + $0x68] sm:$0xff]  ;;  %v34_v26 = vld [vmem:[%s786_s1 + $0x70] sm:$0xff] }
   0xb   :  { %64 = vst [vmem:[%s788_s3 + $0x20] sm:$0xff] %v24_v4  ;;  %v35_v27 = vld [vmem:[%s786_s1 + $0x78] sm:$0xff]  ;;  %v36_v28 = vld [vmem:[%s786_s1 + $0x80] sm:$0xff]  ;;  %v37_v29 = vld [vmem:[%s786_s1 + $0x88] sm:$0xff] }
   0xc   :  { %s306_s17 = sshll.u32 %s101_s16, 4  ;;  %65 = vst [vmem:[%s788_s3 + $0x28] sm:$0xff] %v25_v5  ;;  %v38_v30 = vld [vmem:[%s786_s1 + $0x90] sm:$0xff]  ;;  %v39_v31 = vld [vmem:[%s786_s1 + $0x98] sm:$0xff]  ;;  %v40_v32 = vld [vmem:[%s786_s1 + $0xa0] sm:$0xff] }
   0xd   :  { %s104_s22 = scalar_lea.vmem %s787_s2, %s306_s17  ;;  %66 = vst [vmem:[%s788_s3 + $0x30] sm:$0xff] %v26_v6  ;;  %s307_s25 = sshll.u32 %s295_s0, 4  ;;  %v41_v33 = vld [vmem:[%s786_s1 + $0xa8] sm:$0xff]  ;;  %v42_v34 = vld [vmem:[%s786_s1 + $0xb0] sm:$0xff]  ;;  %v43_v35 = vld [vmem:[%s786_s1 + $0xb8] sm:$0xff] }
   0xe   :  { %v105_v8 = vld [vmem:[%s104_s22] sm:$0xff]  ;;  %v106_v9 = vld [vmem:[%s104_s22 + $0x8] sm:$0xff]  ;;  %67 = vst [vmem:[%s788_s3 + $0x38] sm:$0xff] %v27_v7  ;;  %s217_s29 = scalar_lea.vmem %s787_s2, %s307_s25  ;;  %v46_v38 = vld [vmem:[%s786_s1 + $0xd0] sm:$0xff] }
   0xf   :  { %109 = vst [vmem:[#allocation1] ss:$2 sm:$0xff] %v105_v8  ;;  %v218_v10 = vld [vmem:[%s217_s29] sm:$0xff]  ;;  %v219_v11 = vld [vmem:[%s217_s29 + $0x8] sm:$0xff]  ;;  %v47_v39 = vld [vmem:[%s786_s1 + $0xd8] sm:$0xff] }
  0x10   :  { %111 = vst [vmem:[#allocation1 + $0x10] ss:$2 sm:$0xff] %v106_v9  ;;  %v44_v36 = vld [vmem:[%s786_s1 + $0xc0] sm:$0xff]  ;;  %v45_v37 = vld [vmem:[%s786_s1 + $0xc8] sm:$0xff]  ;;  %v50_v42 = vld [vmem:[%s786_s1 + $0xf0] sm:$0xff] }
  0x11   :  { %255 = vst [vmem:[%s788_s3 + $0x140] sm:$0xff] %v20_v0  ;;  %v48_v40 = vld [vmem:[%s786_s1 + $0xe0] sm:$0xff]  ;;  %v49_v41 = vld [vmem:[%s786_s1 + $0xe8] sm:$0xff]  ;;  %v51_v43 = vld [vmem:[%s786_s1 + $0xf8] sm:$0xff] }
  0x12   :  { %256 = vst [vmem:[%s788_s3 + $0x148] sm:$0xff] %v21_v1  ;;  %v52_v44 = vld [vmem:[%s786_s1 + $0x100] sm:$0xff]  ;;  %v53_v45 = vld [vmem:[%s786_s1 + $0x108] sm:$0xff]  ;;  %v54_v46 = vld [vmem:[%s786_s1 + $0x110] sm:$0xff] }
  0x13   :  { %257 = vst [vmem:[%s788_s3 + $0x150] sm:$0xff] %v22_v2  ;;  %v55_v47 = vld [vmem:[%s786_s1 + $0x118] sm:$0xff]  ;;  %v56_v48 = vld [vmem:[%s786_s1 + $0x120] sm:$0x1f]  ;;  %v57_v49 = vld [vmem:[%s786_s1 + $0x128] sm:$0x1f] }
  0x14   :  { %258 = vst [vmem:[%s788_s3 + $0x158] sm:$0xff] %v23_v3  ;;  %v58_v50 = vld [vmem:[%s786_s1 + $0x130] sm:$0x1f]  ;;  %v59_v51 = vld [vmem:[%s786_s1 + $0x138] sm:$0x1f] }
  0x15   :  { %259 = vst [vmem:[%s788_s3 + $0x160] sm:$0xff] %v24_v4  ;;  %v168_v52 = vld [vmem:[%s786_s1 + $0x120] sm:$0x1f]  ;;  %v169_v54 = vld [vmem:[%s786_s1 + $0x128] sm:$0x1f] }
  0x16   :  { %v112_v12 = vld.sshfl [vmem:[#allocation1] sm:$0xff pattern:$0x75316420]  ;;  %v113_v13 = vld.sshfl [vmem:[#allocation1 + $0x8] sm:$0xff pattern:$0x75316420] }
  0x17   :  { %222 = vst [vmem:[#allocation1] ss:$2 sm:$0xff] %v218_v10  ;;  %v114_v14 = vld.sshfl [vmem:[#allocation1 + $0x10] sm:$0xff pattern:$0x75316420]  ;;  %v116_v15 = vrot.slane %v112_v12, 3 }
  0x18   :  { %v115_v16 = vld.sshfl [vmem:[#allocation1 + $0x18] sm:$0xff pattern:$0x75316420]  ;;  %v117_v17 = vrot.slane %v113_v13, 3  ;;  %260 = vst [vmem:[%s788_s3 + $0x168] sm:$0xff] %v25_v5  ;;  %v118_v18 = vrot.slane %v114_v14, 3 }
  0x19   :  { %224 = vst [vmem:[#allocation1 + $0x10] ss:$2 sm:$0xff] %v219_v11  ;;  %v119_v19 = vrot.slane %v115_v16, 3  ;;  %v170_v55 = vld [vmem:[%s786_s1 + $0x130] sm:$0x1f] }
  0x1a   :  { %124 = vst [vmem:[%s788_s3] sm:$0xe0] %v116_v15  ;;  %v171_v57 = vld [vmem:[%s786_s1 + $0x138] sm:$0x1f] }
  0x1b   :  { %128 = vst [vmem:[%s788_s3 + $0x20] sm:$0x1] %v116_v15 }
  0x1c   :  { %125 = vst [vmem:[%s788_s3 + $0x8] sm:$0xe0] %v117_v17 }
  0x1d   :  { %129 = vst [vmem:[%s788_s3 + $0x28] sm:$0x1] %v117_v17 }
  0x1e   :  { %126 = vst [vmem:[%s788_s3 + $0x10] sm:$0xe0] %v118_v18  ;;  %v225_v53 = vld.sshfl [vmem:[#allocation1] sm:$0xff pattern:$0x75316420] }
  0x1f   :  { %130 = vst [vmem:[%s788_s3 + $0x30] sm:$0x1] %v118_v18  ;;  %v226_v56 = vld.sshfl [vmem:[#allocation1 + $0x8] sm:$0xff pattern:$0x75316420]  ;;  %v229_v58 = vrot.slane %v225_v53, 3 }
  0x20   :  { %127 = vst [vmem:[%s788_s3 + $0x18] sm:$0xe0] %v119_v19  ;;  %v227_v59 = vld.sshfl [vmem:[#allocation1 + $0x10] sm:$0xff pattern:$0x75316420]  ;;  %v230_v60 = vrot.slane %v226_v56, 3 }
  0x21   :  { %131 = vst [vmem:[%s788_s3 + $0x38] sm:$0x1] %v119_v19  ;;  %v228_v61 = vld.sshfl [vmem:[#allocation1 + $0x18] sm:$0xff pattern:$0x75316420]  ;;  %v231_v62 = vrot.slane %v227_v59, 3 }
  0x22   :  { %261 = vst [vmem:[%s788_s3 + $0x170] sm:$0xff] %v26_v6  ;;  %v232_v63 = vrot.slane %v228_v61, 3 }
  0x23   :  { %262 = vst [vmem:[%s788_s3 + $0x178] sm:$0xff] %v27_v7 }
  0x24   :  { %68 = vst [vmem:[%s788_s3 + $0x40] sm:$0xff] %v446_v20 }
  0x25   :  { %69 = vst [vmem:[%s788_s3 + $0x48] sm:$0xff] %v454_v21 }
  0x26   :  { %70 = vst [vmem:[%s788_s3 + $0x50] sm:$0xff] %v462_v22 }
  0x27   :  { %71 = vst [vmem:[%s788_s3 + $0x58] sm:$0xff] %v31_v23 }
  0x28   :  { %72 = vst [vmem:[%s788_s3 + $0x60] sm:$0xff] %v32_v24 }
  0x29   :  { %73 = vst [vmem:[%s788_s3 + $0x68] sm:$0xff] %v33_v25 }
  0x2a   :  { %74 = vst [vmem:[%s788_s3 + $0x70] sm:$0xff] %v34_v26 }
  0x2b   :  { %75 = vst [vmem:[%s788_s3 + $0x78] sm:$0xff] %v35_v27 }
  0x2c   :  { %76 = vst [vmem:[%s788_s3 + $0x80] sm:$0xff] %v36_v28 }
  0x2d   :  { %77 = vst [vmem:[%s788_s3 + $0x88] sm:$0xff] %v37_v29 }
  0x2e   :  { %78 = vst [vmem:[%s788_s3 + $0x90] sm:$0xff] %v38_v30 }
  0x2f   :  { %79 = vst [vmem:[%s788_s3 + $0x98] sm:$0xff] %v39_v31 }
  0x30   :  { %80 = vst [vmem:[%s788_s3 + $0xa0] sm:$0xff] %v40_v32 }
  0x31   :  { %81 = vst [vmem:[%s788_s3 + $0xa8] sm:$0xff] %v41_v33 }
  0x32   :  { %82 = vst [vmem:[%s788_s3 + $0xb0] sm:$0xff] %v42_v34 }
  0x33   :  { %83 = vst [vmem:[%s788_s3 + $0xb8] sm:$0xff] %v43_v35 }
  0x34   :  { %84 = vst [vmem:[%s788_s3 + $0xc0] sm:$0xff] %v44_v36 }
  0x35   :  { %85 = vst [vmem:[%s788_s3 + $0xc8] sm:$0xff] %v45_v37 }
  0x36   :  { %86 = vst [vmem:[%s788_s3 + $0xd0] sm:$0xff] %v46_v38 }
  0x37   :  { %87 = vst [vmem:[%s788_s3 + $0xd8] sm:$0xff] %v47_v39 }
  0x38   :  { %88 = vst [vmem:[%s788_s3 + $0xe0] sm:$0xff] %v48_v40 }
  0x39   :  { %89 = vst [vmem:[%s788_s3 + $0xe8] sm:$0xff] %v49_v41 }
  0x3a   :  { %90 = vst [vmem:[%s788_s3 + $0xf0] sm:$0xff] %v50_v42 }
  0x3b   :  { %91 = vst [vmem:[%s788_s3 + $0xf8] sm:$0xff] %v51_v43 }
  0x3c   :  { %92 = vst [vmem:[%s788_s3 + $0x100] sm:$0xff] %v52_v44 }
  0x3d   :  { %93 = vst [vmem:[%s788_s3 + $0x108] sm:$0xff] %v53_v45 }
  0x3e   :  { %94 = vst [vmem:[%s788_s3 + $0x110] sm:$0xff] %v54_v46 }
  0x3f   :  { %95 = vst [vmem:[%s788_s3 + $0x118] sm:$0xff] %v55_v47 }
  0x40   :  { %96 = vst [vmem:[%s788_s3 + $0x120] sm:$0x1f] %v56_v48 }
  0x41   :  { %97 = vst [vmem:[%s788_s3 + $0x128] sm:$0x1f] %v57_v49 }
  0x42   :  { %98 = vst [vmem:[%s788_s3 + $0x130] sm:$0x1f] %v58_v50 }
  0x43   :  { %99 = vst [vmem:[%s788_s3 + $0x138] sm:$0x1f] %v59_v51 }
  0x44   :  { %263 = vst [vmem:[%s788_s3 + $0x180] sm:$0xff] %v446_v20 }
  0x45   :  { %264 = vst [vmem:[%s788_s3 + $0x188] sm:$0xff] %v454_v21 }
  0x46   :  { %265 = vst [vmem:[%s788_s3 + $0x190] sm:$0xff] %v462_v22 }
  0x47   :  { %266 = vst [vmem:[%s788_s3 + $0x198] sm:$0xff] %v31_v23 }
  0x48   :  { %267 = vst [vmem:[%s788_s3 + $0x1a0] sm:$0xff] %v32_v24 }
  0x49   :  { %268 = vst [vmem:[%s788_s3 + $0x1a8] sm:$0xff] %v33_v25 }
  0x4a   :  { %269 = vst [vmem:[%s788_s3 + $0x1b0] sm:$0xff] %v34_v26 }
  0x4b   :  { %270 = vst [vmem:[%s788_s3 + $0x1b8] sm:$0xff] %v35_v27 }
  0x4c   :  { %271 = vst [vmem:[%s788_s3 + $0x1c0] sm:$0xff] %v36_v28 }
  0x4d   :  { %272 = vst [vmem:[%s788_s3 + $0x1c8] sm:$0xff] %v37_v29 }
  0x4e   :  { %273 = vst [vmem:[%s788_s3 + $0x1d0] sm:$0xff] %v38_v30 }
  0x4f   :  { %274 = vst [vmem:[%s788_s3 + $0x1d8] sm:$0xff] %v39_v31 }
  0x50   :  { %275 = vst [vmem:[%s788_s3 + $0x1e0] sm:$0xff] %v40_v32 }
  0x51   :  { %276 = vst [vmem:[%s788_s3 + $0x1e8] sm:$0xff] %v41_v33 }
  0x52   :  { %277 = vst [vmem:[%s788_s3 + $0x1f0] sm:$0xff] %v42_v34 }
  0x53   :  { %278 = vst [vmem:[%s788_s3 + $0x1f8] sm:$0xff] %v43_v35 }
  0x54   :  { %279 = vst [vmem:[%s788_s3 + $0x200] sm:$0xff] %v44_v36 }
  0x55   :  { %280 = vst [vmem:[%s788_s3 + $0x208] sm:$0xff] %v45_v37 }
  0x56   :  { %281 = vst [vmem:[%s788_s3 + $0x210] sm:$0xff] %v46_v38 }
  0x57   :  { %282 = vst [vmem:[%s788_s3 + $0x218] sm:$0xff] %v47_v39 }
  0x58   :  { %283 = vst [vmem:[%s788_s3 + $0x220] sm:$0xff] %v48_v40 }
  0x59   :  { %284 = vst [vmem:[%s788_s3 + $0x228] sm:$0xff] %v49_v41 }
  0x5a   :  { %285 = vst [vmem:[%s788_s3 + $0x230] sm:$0xff] %v50_v42 }
  0x5b   :  { %286 = vst [vmem:[%s788_s3 + $0x238] sm:$0xff] %v51_v43 }
  0x5c   :  { %287 = vst [vmem:[%s788_s3 + $0x240] sm:$0xff] %v52_v44 }
  0x5d   :  { %288 = vst [vmem:[%s788_s3 + $0x248] sm:$0xff] %v53_v45 }
  0x5e   :  { %289 = vst [vmem:[%s788_s3 + $0x250] sm:$0xff] %v54_v46 }
  0x5f   :  { %290 = vst [vmem:[%s788_s3 + $0x258] sm:$0xff] %v55_v47 }
  0x60   :  { %291 = vst [vmem:[%s788_s3 + $0x260] sm:$0x1f] %v168_v52 }
  0x61   :  { %292 = vst [vmem:[%s788_s3 + $0x268] sm:$0x1f] %v169_v54 }
  0x62   :  { %293 = vst [vmem:[%s788_s3 + $0x270] sm:$0x1f] %v170_v55 }
  0x63   :  { %294 = vst [vmem:[%s788_s3 + $0x278] sm:$0x1f] %v171_v57 }
  0x64   :  { %298 = vst [vmem:[%s788_s3 + $0x140] sm:$0xe0] %v229_v58 }
  0x65   :  { %302 = vst [vmem:[%s788_s3 + $0x160] sm:$0x1] %v229_v58 }
  0x66   :  { %299 = vst [vmem:[%s788_s3 + $0x148] sm:$0xe0] %v230_v60 }
  0x67   :  { %303 = vst [vmem:[%s788_s3 + $0x168] sm:$0x1] %v230_v60 }
  0x68   :  { %300 = vst [vmem:[%s788_s3 + $0x150] sm:$0xe0] %v231_v62 }
  0x69   :  { %304 = vst [vmem:[%s788_s3 + $0x170] sm:$0x1] %v231_v62 }
  0x6a   :  { %301 = vst [vmem:[%s788_s3 + $0x158] sm:$0xe0] %v232_v63 }
  0x6b   :  { %305 = vst [vmem:[%s788_s3 + $0x178] sm:$0x1] %v232_v63 }

</bundles_post_ra>
